<compile_context>
chip_gen: v5e
topology: v5e:2x2
jax: 0.10.0
libtpu: 0.0.40
codegen_flags: <defaults>
</compile_context>

<pallas_src>
import functools

import jax
import jax.numpy as jnp
from jax.experimental import pallas as pl
from jax.experimental.pallas import tpu as pltpu

BN_EPS = 1e-5
LANE = 128
N_PLANES = 6  # loc | logvar | log_z_sh/pr (merged) | log_z_full | theta_sh/pr | theta_full


def _round_up(x, m):
    return (x + m - 1) // m * m


def _masked_softmax(x, mask):
    """Softmax over masked lanes; masked-out lanes produce exactly 0."""
    neg = jnp.float32(-1e30)
    xm = jnp.where(mask, x, neg)
    m = jnp.max(xm, axis=-1, keepdims=True)
    e = jnp.where(mask, jnp.exp(xm - m), 0.0)
    s = jnp.sum(e, axis=-1, keepdims=True)
    # Exact division: rows sum to 1 within f32 rounding (approx reciprocal
    # was only ~1e-3 accurate and broke downstream normalization checks).
    return e / s


def _encoder_kernel(
    n_topics_shared,
    n_topics_total,
    # inputs
    x_ref,                     # (tb, n_input) bf16
    eps_sp_ref, eps_full_ref,  # (tb, Tpad) f32 each
    w1_ref, b1_ref,
    w2_ref, b2_ref,
    wh_ref, bh_ref,
    # packed output: (tb, 6*Tpad) f32
    out_ref,
):
    Ts = n_topics_shared
    T = n_topics_total
    Tpad = eps_full_ref.shape[-1]

    # fc1 + ReLU  (bf16 MXU operands, f32 accumulation)
    h = jnp.dot(x_ref[...], w1_ref[...], preferred_element_type=jnp.float32) + b1_ref[...]
    h = jnp.maximum(h, 0.0)
    # fc2 + ReLU
    h = jnp.dot(h.astype(jnp.bfloat16), w2_ref[...],
                preferred_element_type=jnp.float32) + b2_ref[...]
    h = jnp.maximum(h, 0.0)
    # TODO(synk): dropout is identity (eval mode); training-mode mask not implemented.

    # Fused mu|logvar head; BatchNorm already folded into wh/bh on the host.
    head = jnp.dot(h.astype(jnp.bfloat16), wh_ref[...],
                   preferred_element_type=jnp.float32) + bh_ref[...]
    loc = head[:, :Tpad]          # 128-lane-aligned split
    logvar = head[:, Tpad:]
    scale = jnp.exp(0.5 * logvar)

    lane = jax.lax.broadcasted_iota(jnp.int32, (1, Tpad), 1)
    mask_full = lane < T
    mask_sh = lane < Ts
    mask_pr = (lane >= Ts) & mask_full

    # rsample: eps_sp carries eps_shared in lanes [0,Ts) and eps_private in
    # [Ts,T) (packed on the host), so one FMA produces both samples.
    log_z_sp = loc + scale * eps_sp_ref[...]
    log_z_full = loc + scale * eps_full_ref[...]

    # Shared / private softmaxes normalize over disjoint lane ranges, so their
    # results can share one output plane.
    theta_sp = _masked_softmax(log_z_sp, mask_sh) + _masked_softmax(log_z_sp, mask_pr)
    theta_full = _masked_softmax(log_z_full, mask_full)

    # Lane-dense stores: each plane occupies a 128-aligned lane window of one
    # contiguous (tb, 6*Tpad) block -> unmasked vst, single HBM writeback
    # region per grid step.
    out_ref[:, 0 * Tpad:1 * Tpad] = loc
    out_ref[:, 1 * Tpad:2 * Tpad] = logvar
    out_ref[:, 2 * Tpad:3 * Tpad] = log_z_sp
    out_ref[:, 3 * Tpad:4 * Tpad] = log_z_full
    out_ref[:, 4 * Tpad:5 * Tpad] = theta_sp
    out_ref[:, 5 * Tpad:6 * Tpad] = theta_full


def _resident_spec(shape):
    """Weights/biases pinned in VMEM: same block every grid step, single-buffered."""
    try:
        return pl.BlockSpec(shape, lambda i: (0, 0), pipeline_mode=pl.Buffered(1))
    except (TypeError, AttributeError):  # jax without pipeline_mode support
        return pl.BlockSpec(shape, lambda i: (0, 0))


def encoder_forward(params, data, eps_shared, eps_private, eps_full,
                    n_topics_shared, n_topics_private, *,
                    batch_tile=512, split_for_megacore=False):
    B, n_input = data.shape
    Ts, Tp = n_topics_shared, n_topics_private
    T = Ts + Tp
    Tpad = _round_up(T, LANE)
    hidden = params["w1"].shape[1]

    # ---------------- host-side parameter preparation ----------------
    def fold_bn(w, b, g, beta, rm, rv):
        s = g * jax.lax.rsqrt(rv + BN_EPS)          # (T,)
        return w * s[None, :], (b - rm) * s + beta  # (hidden, T), (T,)

    wmu_f, bmu_f = fold_bn(params["wmu"], params["bmu"], params["gmu"],
                           params["betamu"], params["rmmu"], params["rvmu"])
    wlv_f, blv_f = fold_bn(params["wlv"], params["blv"], params["glv"],
                           params["betalv"], params["rmlv"], params["rvlv"])

    def pad_cols(a, width):
        return jnp.pad(a, ((0, 0), (0, width - a.shape[1])))

    wh = jnp.concatenate([pad_cols(wmu_f, Tpad), pad_cols(wlv_f, Tpad)], axis=1)
    bh = jnp.concatenate([jnp.pad(bmu_f, (0, Tpad - T)),
                          jnp.pad(blv_f, (0, Tpad - T))])[None, :]

    w1 = params["w1"].astype(jnp.bfloat16)
    w2 = params["w2"].astype(jnp.bfloat16)
    wh = wh.astype(jnp.bfloat16)
    b1 = params["b1"][None, :].astype(jnp.float32)
    b2 = params["b2"][None, :].astype(jnp.float32)
    bh = bh.astype(jnp.float32)
    # TODO(synk): optional fp8 weight quantization for fc1/fc2 on v7x not implemented.

    # ---------------- batch tile / VMEM sizing ----------------
    # Soft cap keeps the footprint comfortably inside v7x's 64 MiB physical
    # VMEM; v5e/v6e (128 MiB) can raise batch_tile for bigger tiles.
    VMEM_SOFT_CAP = 40 * 1024 * 1024

    def footprint(tb):
        w_bytes = 2 * (n_input * hidden + hidden * hidden + hidden * 2 * Tpad)  # bf16, 1-buffered
        bias_bytes = 4 * (2 * hidden + 2 * Tpad)
        step = (2 * tb * n_input               # x tile (bf16)
                + 2 * 4 * tb * Tpad            # two eps tiles (f32)
                + 4 * tb * N_PLANES * Tpad)    # output tile (f32)
        live = 4 * tb * (hidden + 2 * Tpad) * 2  # rough live f32 intermediates
        return w_bytes + bias_bytes + 2 * step + live  # batch-varying tiles double-buffered

    tb = max(8, min(batch_tile, _round_up(B, 8)))
    tb = _round_up(tb, 8)
    if split_for_megacore and B > 8:
        # v7x has two TensorCores: guarantee >=2 grid steps so the "parallel"
        # batch axis can shard across them.
        tb = min(tb, _round_up((B + 1) // 2, 8))
    while tb > 8 and footprint(tb) > VMEM_SOFT_CAP:
        tb = max(8, _round_up(tb // 2, 8))
    B_pad = _round_up(B, tb)

    vmem_limit = int(min(max(footprint(tb) * 3 // 2 + (4 << 20), 24 << 20), 48 << 20))

    # ---------------- lane-dense input packing ----------------
    x = jnp.pad(data, ((0, B_pad - B), (0, 0))).astype(jnp.bfloat16)
    eps_sp = (jnp.zeros((B_pad, Tpad), jnp.float32)
              .at[:B, :Ts].set(eps_shared)
              .at[:B, Ts:T].set(eps_private))
    eps_fu = jnp.zeros((B_pad, Tpad), jnp.float32).at[:B, :T].set(eps_full)

    grid = (B_pad // tb,)

    in_specs = [
        pl.BlockSpec((tb, n_input), lambda i: (i, 0)),   # x (bf16)
        pl.BlockSpec((tb, Tpad), lambda i: (i, 0)),      # eps shared|private packed
        pl.BlockSpec((tb, Tpad), lambda i: (i, 0)),      # eps full
        _resident_spec((n_input, hidden)),               # w1 (bf16)
        _resident_spec((1, hidden)),                     # b1
        _resident_spec((hidden, hidden)),                # w2 (bf16)
        _resident_spec((1, hidden)),                     # b2
        _resident_spec((hidden, 2 * Tpad)),              # fused head W (bf16)
        _resident_spec((1, 2 * Tpad)),                   # fused head b
    ]
    out_specs = pl.BlockSpec((tb, N_PLANES * Tpad), lambda i: (i, 0))
    out_shape = jax.ShapeDtypeStruct((B_pad, N_PLANES * Tpad), jnp.float32)

    flops = 2 * B_pad * (n_input * hidden + hidden * hidden + hidden * 2 * Tpad)
    transcendentals = 4 * B_pad * Tpad
    bytes_accessed = (
        2 * B_pad * n_input + 2 * 4 * B_pad * Tpad                      # x(bf16) + eps
        + 2 * (n_input * hidden + hidden * hidden + hidden * 2 * Tpad)  # bf16 weights
        + 4 * (2 * hidden + 2 * Tpad)                                   # biases
        + 4 * N_PLANES * B_pad * Tpad                                   # outputs
    )

    kernel = functools.partial(_encoder_kernel, Ts, T)
    out = pl.pallas_call(
        kernel,
        grid=grid,
        in_specs=in_specs,
        out_specs=out_specs,
        out_shape=out_shape,
        compiler_params=pltpu.CompilerParams(
            dimension_semantics=("parallel",),
            vmem_limit_bytes=vmem_limit,
        ),
        cost_estimate=pl.CostEstimate(
            flops=int(flops),
            transcendentals=int(transcendentals),
            bytes_accessed=int(bytes_accessed),
        ),
    )(x, eps_sp, eps_fu, w1, b1, w2, b2, wh, bh)

    # ---------------- unpack lane-dense slab on the host ----------------
    out = out.reshape(B_pad, N_PLANES, Tpad)
    loc = out[:B, 0, :T]
    logvar = out[:B, 1, :T]
    scale = jnp.exp(0.5 * logvar)        # recomputed on host (plane dropped)
    logz_sp = out[:B, 2, :]
    logz_full = out[:B, 3, :T]
    th_sp = out[:B, 4, :]
    th_full = out[:B, 5, :T]

    logz_sh, logz_pr = logz_sp[:, :Ts], logz_sp[:, Ts:T]
    th_sh, th_pr = th_sp[:, :Ts], th_sp[:, Ts:T]

    private_stats = {
        "logtheta_loc": loc[:, Ts:], "logtheta_logvar": logvar[:, Ts:],
        "logtheta_scale": scale[:, Ts:], "log_z": logz_pr, "theta": th_pr,
        "qz": (loc[:, Ts:], scale[:, Ts:]),
    }
    shared_stats = {
        "logtheta_loc": loc[:, :Ts], "logtheta_logvar": logvar[:, :Ts],
        "logtheta_scale": scale[:, :Ts], "log_z": logz_sh, "theta": th_sh,
        "qz": (loc[:, :Ts], scale[:, :Ts]),
    }
    ps_stats = {
        "logtheta_loc": loc, "logtheta_logvar": logvar, "logtheta_scale": scale,
        "log_z": logz_full, "theta": th_full, "qz": (loc, scale),
    }
    return {"private": private_stats, "shared": shared_stats, "ps": ps_stats}


# ---------------------- pure-JAX reference (f32, unfused) ----------------------
def encoder_reference(params, data, eps_shared, eps_private, eps_full, Ts, Tp):
    def bn(x, g, beta, rm, rv):
        return g * (x - rm) * jax.lax.rsqrt(rv + BN_EPS) + beta

    h = jax.nn.relu(data @ params["w1"] + params["b1"])
    h = jax.nn.relu(h @ params["w2"] + params["b2"])
    loc = bn(h @ params["wmu"] + params["bmu"], params["gmu"],
             params["betamu"], params["rmmu"], params["rvmu"])
    logvar = bn(h @ params["wlv"] + params["blv"], params["glv"],
                params["betalv"], params["rmlv"], params["rvlv"])
    scale = jnp.exp(0.5 * logvar)
    T = Ts + Tp
    logz_sh = loc[:, :Ts] + scale[:, :Ts] * eps_shared
    logz_pr = loc[:, Ts:T] + scale[:, Ts:T] * eps_private
    logz_full = loc + scale * eps_full
    return dict(loc=loc, logvar=logvar, scale=scale,
                th_sh=jax.nn.softmax(logz_sh, -1),
                th_pr=jax.nn.softmax(logz_pr, -1),
                th_full=jax.nn.softmax(logz_full, -1))


def init_params(key, n_input, hidden, n_topics):
    ks = jax.random.split(key, 16)
    f32 = jnp.float32

    def lin(kw, kb, fan_in, fan_out):
        bound = 1.0 / jnp.sqrt(fan_in)
        w = jax.random.uniform(kw, (fan_in, fan_out), f32, -bound, bound)
        b = jax.random.uniform(kb, (fan_out,), f32, -bound, bound)
        return w, b

    w1, b1 = lin(ks[0], ks[1], n_input, hidden)
    w2, b2 = lin(ks[2], ks[3], hidden, hidden)
    wmu, bmu = lin(ks[4], ks[5], hidden, n_topics)
    wlv, blv = lin(ks[6], ks[7], hidden, n_topics)

    gmu = 1.0 + 0.1 * jax.random.normal(ks[8], (n_topics,), f32)
    betamu = 0.1 * jax.random.normal(ks[9], (n_topics,), f32)
    rmmu = 0.05 * jax.random.normal(ks[10], (n_topics,), f32)
    rvmu = 1.0 + 0.1 * jax.random.uniform(ks[11], (n_topics,), f32)
    glv = 1.0 + 0.1 * jax.random.normal(ks[12], (n_topics,), f32)
    betalv = 0.1 * jax.random.normal(ks[13], (n_topics,), f32)
    rmlv = 0.05 * jax.random.normal(ks[14], (n_topics,), f32)
    rvlv = 1.0 + 0.1 * jax.random.uniform(ks[15], (n_topics,), f32)

    return dict(w1=w1, b1=b1, w2=w2, b2=b2,
                wmu=wmu, bmu=bmu, gmu=gmu, betamu=betamu, rmmu=rmmu, rvmu=rvmu,
                wlv=wlv, blv=blv, glv=glv, betalv=betalv, rmlv=rmlv, rvlv=rvlv)


if __name__ == "__main__":
    # Small shapes consistent with the module's forward (n_cat_list=None).
    B = 8
    n_input = 32
    hidden = 32
    n_topics_shared = 8
    n_topics_private = 8
    T = n_topics_shared + n_topics_private

    key = jax.random.PRNGKey(0)
    k_param, k_data, k_es, k_ep, k_ef = jax.random.split(key, 5)

    params = init_params(k_param, n_input, hidden, T)
    data = jax.nn.relu(jax.random.normal(k_data, (B, n_input), jnp.float32))

    eps_shared = jax.random.normal(k_es, (B, n_topics_shared), jnp.float32)
    eps_private = jax.random.normal(k_ep, (B, n_topics_private), jnp.float32)
    eps_full = jax.random.normal(k_ef, (B, T), jnp.float32)

    out = encoder_forward(params, data, eps_shared, eps_private, eps_full,
                          n_topics_shared, n_topics_private)
    jax.block_until_ready(out)

    # --- sanity: softmax rows sum to 1, shapes correct -----------------
    for th in (out["ps"]["theta"], out["shared"]["theta"], out["private"]["theta"]):
        s = jnp.sum(th, axis=-1)
        assert bool(jnp.allclose(s, 1.0, atol=1e-4)), "softmax rows must sum to 1"
    assert out["shared"]["theta"].shape == (B, n_topics_shared)
    assert out["private"]["theta"].shape == (B, n_topics_private)
    assert out["ps"]["theta"].shape == (B, T)

    # --- tolerance test vs f32 unfused reference (bf16 weights/activations
    #     + folded BN introduce small numerical differences) --------------
    ref = encoder_reference(params, data, eps_shared, eps_private, eps_full,
                            n_topics_shared, n_topics_private)
    checks = [
        (out["ps"]["logtheta_loc"], ref["loc"]),
        (out["ps"]["logtheta_logvar"], ref["logvar"]),
        (out["ps"]["logtheta_scale"], ref["scale"]),
        (out["shared"]["theta"], ref["th_sh"]),
        (out["private"]["theta"], ref["th_pr"]),
        (out["ps"]["theta"], ref["th_full"]),
    ]
    for got, want in checks:
        err = float(jnp.max(jnp.abs(got - want)))
        assert err < 1e-1, f"mismatch vs reference: max abs err {err}"

    print("KERNEL_OK")
</pallas_src>

<mosaic_0001>
module attributes {stable_mosaic.version = 11 : i64} {
  func.func @_encoder_kernel(%arg0: i32, %arg1: memref<8x32xbf16, #tpu.memory_space<vmem>>, %arg2: memref<8x128xf32, #tpu.memory_space<vmem>>, %arg3: memref<8x128xf32, #tpu.memory_space<vmem>>, %arg4: memref<32x32xbf16, #tpu.memory_space<vmem>>, %arg5: memref<1x32xf32, #tpu.memory_space<vmem>>, %arg6: memref<32x32xbf16, #tpu.memory_space<vmem>>, %arg7: memref<1x32xf32, #tpu.memory_space<vmem>>, %arg8: memref<32x256xbf16, #tpu.memory_space<vmem>>, %arg9: memref<1x256xf32, #tpu.memory_space<vmem>>, %arg10: memref<8x768xf32, #tpu.memory_space<vmem>>) attributes {dimension_semantics = [#tpu.dimension_semantics<parallel>], iteration_bounds = array<i64: 1>, scalar_prefetch = 0 : i64, scratch_operands = 0 : i64, tpu.core_type = #tpu.core_type<tc>, window_params = [{transform_indices = @transform_0, window_bounds = array<i64: 8, 32>}, {transform_indices = @transform_1, window_bounds = array<i64: 8, 128>}, {transform_indices = @transform_2, window_bounds = array<i64: 8, 128>}, {pipeline_mode = #tpu.pipeline_mode<synchronous>, transform_indices = @transform_3, window_bounds = array<i64: 32, 32>}, {pipeline_mode = #tpu.pipeline_mode<synchronous>, transform_indices = @transform_4, window_bounds = array<i64: 1, 32>}, {pipeline_mode = #tpu.pipeline_mode<synchronous>, transform_indices = @transform_5, window_bounds = array<i64: 32, 32>}, {pipeline_mode = #tpu.pipeline_mode<synchronous>, transform_indices = @transform_6, window_bounds = array<i64: 1, 32>}, {pipeline_mode = #tpu.pipeline_mode<synchronous>, transform_indices = @transform_7, window_bounds = array<i64: 32, 256>}, {pipeline_mode = #tpu.pipeline_mode<synchronous>, transform_indices = @transform_8, window_bounds = array<i64: 1, 256>}, {transform_indices = @transform_9, window_bounds = array<i64: 8, 768>}]} {
    %c0 = arith.constant 0 : index
    %c0_0 = arith.constant 0 : index
    %0 = vector.load %arg1[%c0, %c0_0] : memref<8x32xbf16, #tpu.memory_space<vmem>>, vector<8x32xbf16>
    %c0_1 = arith.constant 0 : index
    %c0_2 = arith.constant 0 : index
    %1 = vector.load %arg4[%c0_1, %c0_2] : memref<32x32xbf16, #tpu.memory_space<vmem>>, vector<32x32xbf16>
    %cst = arith.constant dense<0.000000e+00> : vector<8x32xf32>
    %2 = tpu.matmul %0, %1, %cst {dimension_numbers = #tpu.dot_dimension_numbers<[1], [0], [0], [1], [0, 0, 1, 1], [], []>} : vector<8x32xbf16>, vector<32x32xbf16>, vector<8x32xf32> -> vector<8x32xf32>
    %c0_3 = arith.constant 0 : index
    %c0_4 = arith.constant 0 : index
    %3 = vector.load %arg5[%c0_3, %c0_4] : memref<1x32xf32, #tpu.memory_space<vmem>>, vector<1x32xf32>
    %4 = vector.broadcast %3 : vector<1x32xf32> to vector<8x32xf32>
    %5 = arith.addf %2, %4 : vector<8x32xf32>
    %cst_5 = arith.constant 0.000000e+00 : f32
    %6 = vector.broadcast %cst_5 : f32 to vector<8x32xf32>
    %7 = arith.maximumf %5, %6 : vector<8x32xf32>
    %8 = arith.truncf %7 : vector<8x32xf32> to vector<8x32xbf16>
    %c0_6 = arith.constant 0 : index
    %c0_7 = arith.constant 0 : index
    %9 = vector.load %arg6[%c0_6, %c0_7] : memref<32x32xbf16, #tpu.memory_space<vmem>>, vector<32x32xbf16>
    %cst_8 = arith.constant dense<0.000000e+00> : vector<8x32xf32>
    %10 = tpu.matmul %8, %9, %cst_8 {dimension_numbers = #tpu.dot_dimension_numbers<[1], [0], [0], [1], [0, 0, 1, 1], [], []>} : vector<8x32xbf16>, vector<32x32xbf16>, vector<8x32xf32> -> vector<8x32xf32>
    %c0_9 = arith.constant 0 : index
    %c0_10 = arith.constant 0 : index
    %11 = vector.load %arg7[%c0_9, %c0_10] : memref<1x32xf32, #tpu.memory_space<vmem>>, vector<1x32xf32>
    %12 = vector.broadcast %11 : vector<1x32xf32> to vector<8x32xf32>
    %13 = arith.addf %10, %12 : vector<8x32xf32>
    %cst_11 = arith.constant 0.000000e+00 : f32
    %14 = vector.broadcast %cst_11 : f32 to vector<8x32xf32>
    %15 = arith.maximumf %13, %14 : vector<8x32xf32>
    %16 = arith.truncf %15 : vector<8x32xf32> to vector<8x32xbf16>
    %c0_12 = arith.constant 0 : index
    %c0_13 = arith.constant 0 : index
    %17 = vector.load %arg8[%c0_12, %c0_13] : memref<32x256xbf16, #tpu.memory_space<vmem>>, vector<32x256xbf16>
    %cst_14 = arith.constant dense<0.000000e+00> : vector<8x256xf32>
    %18 = tpu.matmul %16, %17, %cst_14 {dimension_numbers = #tpu.dot_dimension_numbers<[1], [0], [0], [1], [0, 0, 1, 1], [], []>} : vector<8x32xbf16>, vector<32x256xbf16>, vector<8x256xf32> -> vector<8x256xf32>
    %c0_15 = arith.constant 0 : index
    %c0_16 = arith.constant 0 : index
    %19 = vector.load %arg9[%c0_15, %c0_16] : memref<1x256xf32, #tpu.memory_space<vmem>>, vector<1x256xf32>
    %20 = vector.broadcast %19 : vector<1x256xf32> to vector<8x256xf32>
    %21 = arith.addf %18, %20 : vector<8x256xf32>
    %22 = vector.extract_strided_slice %21 {offsets = [0, 0], sizes = [8, 128], strides = [1, 1]} : vector<8x256xf32> to vector<8x128xf32>
    %23 = vector.extract_strided_slice %21 {offsets = [0, 128], sizes = [8, 128], strides = [1, 1]} : vector<8x256xf32> to vector<8x128xf32>
    %cst_17 = arith.constant 5.000000e-01 : f32
    %24 = vector.broadcast %cst_17 : f32 to vector<8x128xf32>
    %25 = arith.mulf %24, %23 : vector<8x128xf32>
    %26 = math.exp %25 : vector<8x128xf32>
    %27 = tpu.iota {dimensions = array<i32: 1>} : vector<1x128xi32>
    %c16_i32 = arith.constant 16 : i32
    %28 = vector.broadcast %c16_i32 : i32 to vector<1x128xi32>
    %29 = arith.cmpi slt, %27, %28 : vector<1x128xi32>
    %c8_i32 = arith.constant 8 : i32
    %30 = vector.broadcast %c8_i32 : i32 to vector<1x128xi32>
    %31 = arith.cmpi slt, %27, %30 : vector<1x128xi32>
    %c8_i32_18 = arith.constant 8 : i32
    %32 = vector.broadcast %c8_i32_18 : i32 to vector<1x128xi32>
    %33 = arith.cmpi sge, %27, %32 : vector<1x128xi32>
    %34 = arith.andi %33, %29 : vector<1x128xi1>
    %c0_19 = arith.constant 0 : index
    %c0_20 = arith.constant 0 : index
    %35 = vector.load %arg2[%c0_19, %c0_20] : memref<8x128xf32, #tpu.memory_space<vmem>>, vector<8x128xf32>
    %36 = arith.mulf %26, %35 : vector<8x128xf32>
    %37 = arith.addf %22, %36 : vector<8x128xf32>
    %c0_21 = arith.constant 0 : index
    %c0_22 = arith.constant 0 : index
    %38 = vector.load %arg3[%c0_21, %c0_22] : memref<8x128xf32, #tpu.memory_space<vmem>>, vector<8x128xf32>
    %39 = arith.mulf %26, %38 : vector<8x128xf32>
    %40 = arith.addf %22, %39 : vector<8x128xf32>
    %cst_23 = arith.constant -1.000000e+30 : f32
    %41 = vector.shape_cast %31 : vector<1x128xi1> to vector<1x128xi1>
    %42 = vector.broadcast %41 : vector<1x128xi1> to vector<8x128xi1>
    %43 = vector.broadcast %cst_23 : f32 to vector<8x128xf32>
    %44 = arith.select %42, %37, %43 : vector<8x128xi1>, vector<8x128xf32>
    %cst_24 = arith.constant dense<0xFF800000> : vector<8xf32>
    %45 = vector.multi_reduction <maximumf>, %44, %cst_24 [1] : vector<8x128xf32> to vector<8xf32>
    %46 = vector.shape_cast %45 : vector<8xf32> to vector<8x1xf32>
    %47 = vector.broadcast %46 : vector<8x1xf32> to vector<8x128xf32>
    %48 = arith.subf %44, %47 : vector<8x128xf32>
    %49 = math.exp %48 : vector<8x128xf32>
    %cst_25 = arith.constant 0.000000e+00 : f32
    %50 = vector.shape_cast %31 : vector<1x128xi1> to vector<1x128xi1>
    %51 = vector.broadcast %50 : vector<1x128xi1> to vector<8x128xi1>
    %52 = vector.broadcast %cst_25 : f32 to vector<8x128xf32>
    %53 = arith.select %51, %49, %52 : vector<8x128xi1>, vector<8x128xf32>
    %cst_26 = arith.constant dense<0.000000e+00> : vector<8xf32>
    %54 = vector.multi_reduction <add>, %53, %cst_26 [1] : vector<8x128xf32> to vector<8xf32>
    %55 = vector.shape_cast %54 : vector<8xf32> to vector<8x1xf32>
    %56 = vector.broadcast %55 : vector<8x1xf32> to vector<8x128xf32>
    %57 = arith.divf %53, %56 : vector<8x128xf32>
    %cst_27 = arith.constant -1.000000e+30 : f32
    %58 = vector.shape_cast %34 : vector<1x128xi1> to vector<1x128xi1>
    %59 = vector.broadcast %58 : vector<1x128xi1> to vector<8x128xi1>
    %60 = vector.broadcast %cst_27 : f32 to vector<8x128xf32>
    %61 = arith.select %59, %37, %60 : vector<8x128xi1>, vector<8x128xf32>
    %cst_28 = arith.constant dense<0xFF800000> : vector<8xf32>
    %62 = vector.multi_reduction <maximumf>, %61, %cst_28 [1] : vector<8x128xf32> to vector<8xf32>
    %63 = vector.shape_cast %62 : vector<8xf32> to vector<8x1xf32>
    %64 = vector.broadcast %63 : vector<8x1xf32> to vector<8x128xf32>
    %65 = arith.subf %61, %64 : vector<8x128xf32>
    %66 = math.exp %65 : vector<8x128xf32>
    %cst_29 = arith.constant 0.000000e+00 : f32
    %67 = vector.shape_cast %34 : vector<1x128xi1> to vector<1x128xi1>
    %68 = vector.broadcast %67 : vector<1x128xi1> to vector<8x128xi1>
    %69 = vector.broadcast %cst_29 : f32 to vector<8x128xf32>
    %70 = arith.select %68, %66, %69 : vector<8x128xi1>, vector<8x128xf32>
    %cst_30 = arith.constant dense<0.000000e+00> : vector<8xf32>
    %71 = vector.multi_reduction <add>, %70, %cst_30 [1] : vector<8x128xf32> to vector<8xf32>
    %72 = vector.shape_cast %71 : vector<8xf32> to vector<8x1xf32>
    %73 = vector.broadcast %72 : vector<8x1xf32> to vector<8x128xf32>
    %74 = arith.divf %70, %73 : vector<8x128xf32>
    %75 = arith.addf %57, %74 : vector<8x128xf32>
    %cst_31 = arith.constant -1.000000e+30 : f32
    %76 = vector.shape_cast %29 : vector<1x128xi1> to vector<1x128xi1>
    %77 = vector.broadcast %76 : vector<1x128xi1> to vector<8x128xi1>
    %78 = vector.broadcast %cst_31 : f32 to vector<8x128xf32>
    %79 = arith.select %77, %40, %78 : vector<8x128xi1>, vector<8x128xf32>
    %cst_32 = arith.constant dense<0xFF800000> : vector<8xf32>
    %80 = vector.multi_reduction <maximumf>, %79, %cst_32 [1] : vector<8x128xf32> to vector<8xf32>
    %81 = vector.shape_cast %80 : vector<8xf32> to vector<8x1xf32>
    %82 = vector.broadcast %81 : vector<8x1xf32> to vector<8x128xf32>
    %83 = arith.subf %79, %82 : vector<8x128xf32>
    %84 = math.exp %83 : vector<8x128xf32>
    %cst_33 = arith.constant 0.000000e+00 : f32
    %85 = vector.shape_cast %29 : vector<1x128xi1> to vector<1x128xi1>
    %86 = vector.broadcast %85 : vector<1x128xi1> to vector<8x128xi1>
    %87 = vector.broadcast %cst_33 : f32 to vector<8x128xf32>
    %88 = arith.select %86, %84, %87 : vector<8x128xi1>, vector<8x128xf32>
    %cst_34 = arith.constant dense<0.000000e+00> : vector<8xf32>
    %89 = vector.multi_reduction <add>, %88, %cst_34 [1] : vector<8x128xf32> to vector<8xf32>
    %90 = vector.shape_cast %89 : vector<8xf32> to vector<8x1xf32>
    %91 = vector.broadcast %90 : vector<8x1xf32> to vector<8x128xf32>
    %92 = arith.divf %88, %91 : vector<8x128xf32>
    %c0_35 = arith.constant 0 : index
    %c0_36 = arith.constant 0 : index
    %93 = vector.load %arg10[%c0_35, %c0_36] : memref<8x768xf32, #tpu.memory_space<vmem>>, vector<8x128xf32>
    tpu.vector_store %arg10[%c0_35, %c0_36], %22 {strides = array<i32>} : memref<8x768xf32, #tpu.memory_space<vmem>>, vector<8x128xf32>,
    %c0_37 = arith.constant 0 : index
    %c128 = arith.constant 128 : index
    %94 = vector.load %arg10[%c0_37, %c128] : memref<8x768xf32, #tpu.memory_space<vmem>>, vector<8x128xf32>
    tpu.vector_store %arg10[%c0_37, %c128], %23 {strides = array<i32>} : memref<8x768xf32, #tpu.memory_space<vmem>>, vector<8x128xf32>,
    %c0_38 = arith.constant 0 : index
    %c256 = arith.constant 256 : index
    %95 = vector.load %arg10[%c0_38, %c256] : memref<8x768xf32, #tpu.memory_space<vmem>>, vector<8x128xf32>
    tpu.vector_store %arg10[%c0_38, %c256], %37 {strides = array<i32>} : memref<8x768xf32, #tpu.memory_space<vmem>>, vector<8x128xf32>,
    %c0_39 = arith.constant 0 : index
    %c384 = arith.constant 384 : index
    %96 = vector.load %arg10[%c0_39, %c384] : memref<8x768xf32, #tpu.memory_space<vmem>>, vector<8x128xf32>
    tpu.vector_store %arg10[%c0_39, %c384], %40 {strides = array<i32>} : memref<8x768xf32, #tpu.memory_space<vmem>>, vector<8x128xf32>,
    %c0_40 = arith.constant 0 : index
    %c512 = arith.constant 512 : index
    %97 = vector.load %arg10[%c0_40, %c512] : memref<8x768xf32, #tpu.memory_space<vmem>>, vector<8x128xf32>
    tpu.vector_store %arg10[%c0_40, %c512], %75 {strides = array<i32>} : memref<8x768xf32, #tpu.memory_space<vmem>>, vector<8x128xf32>,
    %c0_41 = arith.constant 0 : index
    %c640 = arith.constant 640 : index
    %98 = vector.load %arg10[%c0_41, %c640] : memref<8x768xf32, #tpu.memory_space<vmem>>, vector<8x128xf32>
    tpu.vector_store %arg10[%c0_41, %c640], %92 {strides = array<i32>} : memref<8x768xf32, #tpu.memory_space<vmem>>, vector<8x128xf32>,
    return
  }
  func.func @transform_0(%arg0: i32) -> (i32, i32) {
    %c0_i32 = arith.constant 0 : i32
    %c0_i32_0 = arith.constant 0 : i32
    return %arg0, %c0_i32 : i32, i32
  }
  func.func @transform_1(%arg0: i32) -> (i32, i32) {
    %c0_i32 = arith.constant 0 : i32
    %c0_i32_0 = arith.constant 0 : i32
    return %arg0, %c0_i32 : i32, i32
  }
  func.func @transform_2(%arg0: i32) -> (i32, i32) {
    %c0_i32 = arith.constant 0 : i32
    %c0_i32_0 = arith.constant 0 : i32
    return %arg0, %c0_i32 : i32, i32
  }
  func.func @transform_3(%arg0: i32) -> (i32, i32) {
    %c0_i32 = arith.constant 0 : i32
    %c0_i32_0 = arith.constant 0 : i32
    %c0_i32_1 = arith.constant 0 : i32
    return %c0_i32, %c0_i32_0 : i32, i32
  }
  func.func @transform_4(%arg0: i32) -> (i32, i32) {
    %c0_i32 = arith.constant 0 : i32
    %c0_i32_0 = arith.constant 0 : i32
    %c0_i32_1 = arith.constant 0 : i32
    return %c0_i32, %c0_i32_0 : i32, i32
  }
  func.func @transform_5(%arg0: i32) -> (i32, i32) {
    %c0_i32 = arith.constant 0 : i32
    %c0_i32_0 = arith.constant 0 : i32
    %c0_i32_1 = arith.constant 0 : i32
    return %c0_i32, %c0_i32_0 : i32, i32
  }
  func.func @transform_6(%arg0: i32) -> (i32, i32) {
    %c0_i32 = arith.constant 0 : i32
    %c0_i32_0 = arith.constant 0 : i32
    %c0_i32_1 = arith.constant 0 : i32
    return %c0_i32, %c0_i32_0 : i32, i32
  }
  func.func @transform_7(%arg0: i32) -> (i32, i32) {
    %c0_i32 = arith.constant 0 : i32
    %c0_i32_0 = arith.constant 0 : i32
    %c0_i32_1 = arith.constant 0 : i32
    return %c0_i32, %c0_i32_0 : i32, i32
  }
  func.func @transform_8(%arg0: i32) -> (i32, i32) {
    %c0_i32 = arith.constant 0 : i32
    %c0_i32_0 = arith.constant 0 : i32
    %c0_i32_1 = arith.constant 0 : i32
    return %c0_i32, %c0_i32_0 : i32, i32
  }
  func.func @transform_9(%arg0: i32) -> (i32, i32) {
    %c0_i32 = arith.constant 0 : i32
    %c0_i32_0 = arith.constant 0 : i32
    return %arg0, %c0_i32 : i32, i32
  }
}

</mosaic_0001>

<bundles_post_ra>
// kernel: tpu_custom_call.1
= control target key start
LH: loop header
LB: loop body
LE: loop exit
PB: predicated region body
PF: predicated region fallthrough
CT: control target
= control target key end

     0   :  { %14 = vsyncpa [#allocation3], 0  ;;  %s736_s0 = inlined_call_operand.hbm [shape: bf16[8,32], index: 0, kind: input, shape index: {}]   ;;  %s737_s1 = inlined_call_operand.hbm [shape: f32[8,128], index: 1, kind: input, shape index: {}]   ;;  %s738_s2 = inlined_call_operand.hbm [shape: f32[8,128], index: 2, kind: input, shape index: {}]   ;;  %s739_s3 = inlined_call_operand.hbm [shape: bf16[32,32], index: 3, kind: input, shape index: {}]   ;;  %s740_s4 = inlined_call_operand.vmem [shape: f32[1,32], index: 4, kind: input, shape index: {}]   ;;  %s741_s5 = inlined_call_operand.hbm [shape: bf16[32,32], index: 5, kind: input, shape index: {}]   ;;  %s742_s6 = inlined_call_operand.vmem [shape: f32[1,32], index: 6, kind: input, shape index: {}]   ;;  %s743_s7 = inlined_call_operand.hbm [shape: bf16[32,256], index: 7, kind: input, shape index: {}]   ;;  %s744_s8 = inlined_call_operand.vmem [shape: f32[1,256], index: 8, kind: input, shape index: {}]   ;;  %s745_s9 = inlined_call_operand.hbm [shape: f32[8,768], index: 9, kind: output, shape index: {}]  }
   0x1   :  { %15 = vsyncpa [#allocation6], 0 }
   0x2   :  { %16 = vsyncpa [#allocation9], 0 }
   0x3   :  { %17 = vsyncpa [#allocation12], 0  ;;  %s35_s11 = sshll.u32 %s737_s1, 4  ;;  %s36_s11 = int_to_ptr.hbm [resolvable:$true] %s35_s11 }
   0x4   :  { %18 = vsyncpa [#allocation4], 0  ;;  %s628_s12 = smov [#allocation5]   ;;  %s56_s16 = sshll.u32 %s739_s3, 4  ;;  %s57_s16 = int_to_ptr.hbm [resolvable:$true] %s56_s16 }
   0x5   :  { %s37_s13 = sshll.u32 %s628_s12, 4  ;;  %s629_s17 = smov [#allocation8]   ;;  %s38_s13 = int_to_ptr.vmem [resolvable:$true] %s37_s13 }
   0x6   :  { %40 = dma.hbm_to_vmem [thread:$0]  %s36_s11, 128, %s38_s13, [#allocation6]  }
   0x7   :  { %s58_s18 = sshll.u32 %s629_s17, 4  ;;  %s630_s19 = smov 64   ;;  %s59_s18 = int_to_ptr.vmem [resolvable:$true] %s58_s18 }
   0x8   :  { %s631_s20 = smov 4   ;;  %s24_s1 = sshll.u32 %s736_s0, 4  ;;  %s25_s1 = int_to_ptr.hbm [resolvable:$true] %s24_s1 }
   0x9   :  { %64 = dma.hbm_to_vmem [thread:$0]  %s57_s16, 256, %s59_s18, [#allocation9], %s630_s19, %s630_s19, %s631_s20  }
   0xa   :  { %s632_s23 = smov [#allocation2]   ;;  %s46_s3 = sshll.u32 %s738_s2, 4  ;;  %s47_s3 = int_to_ptr.hbm [resolvable:$true] %s46_s3 }
   0xb   :  { %s26_s24 = sshll.u32 %s632_s23, 4  ;;  %s633_s27 = smov [#allocation7]   ;;  %s27_s24 = int_to_ptr.vmem [resolvable:$true] %s26_s24 }
   0xc   :  { %29 = dma.hbm_to_vmem [thread:$0]  %s25_s1, 64, %s27_s24, [#allocation3]  }
   0xd   :  { %s48_s28 = sshll.u32 %s633_s27, 4  ;;  %s71_s10 = sshll.u32 %s741_s5, 4  ;;  %s49_s28 = int_to_ptr.vmem [resolvable:$true] %s48_s28  ;;  %s72_s10 = int_to_ptr.hbm [resolvable:$true] %s71_s10 }
   0xe   :  { %51 = dma.hbm_to_vmem [thread:$0]  %s47_s3, 128, %s49_s28, [#allocation6]  }
   0xf   :  { %s86_s12 = sshll.u32 %s743_s7, 4  ;;  %s634_s13 = smov [#allocation10]   ;;  %s87_s12 = int_to_ptr.hbm [resolvable:$true] %s86_s12 }
  0x10   :  { %s73_s14 = sshll.u32 %s634_s13, 4  ;;  %s635_s2 = smov [#allocation11]   ;;  %s74_s14 = int_to_ptr.vmem [resolvable:$true] %s73_s14 }
  0x11   :  { %79 = dma.hbm_to_vmem [thread:$0]  %s72_s10, 256, %s74_s14, [#allocation9], %s630_s19, %s630_s19, %s631_s20  }
  0x12   :  { %s88_s15 = sshll.u32 %s635_s2, 4  ;;  %s636_s16 = smov 128   ;;  %s89_s15 = int_to_ptr.vmem [resolvable:$true] %s88_s15 }
  0x13   :  { %s637_s17 = smov 8  }
  0x14   :  { %94 = dma.hbm_to_vmem [thread:$0]  %s87_s12, 512, %s89_s15, [#allocation12], %s636_s16, %s636_s16, %s637_s17  }
  0x15   :  { %618 = dma.done.wait [#allocation3], 64  }
  0x16   :  { %619 = vsyncadd [#allocation3], 4294967232 }
  0x17   :  { %620 = dma.done.wait [#allocation6], 256  }
  0x18   :  { %621 = vsyncadd [#allocation6], 4294967040 }
  0x19   :  { %622 = dma.done.wait [#allocation9], 512  }
  0x1a   :  { %623 = vsyncadd [#allocation9], 4294966784 }
  0x1b   :  { %624 = dma.done.wait [#allocation12], 512  }
  0x1c   :  { %625 = vsyncadd [#allocation12], 4294966784  ;;  %v416_v0 = vld [vmem:[#allocation8 + $0x8] sm:$0xff]  ;;  %v415_v1 = vld [vmem:[#allocation8] sm:$0xff]  ;;  %vm143_vm0 = vcmask 261120   ;;  %v262_v38 = vlaneseq  ;;  %s366_s1 = sshll.u32 %s745_s9, 4  ;;  %s367_s1 = int_to_ptr.hbm [resolvable:$true] %s366_s1 }
  0x1d   :  { %153 = vmatpush.bf16.msra.mxu0 %v416_v0  ;;  %v122_v2 = vld [vmem:[#allocation2] sm:$0xf]  ;;  %v418_v3 = vld [vmem:[#allocation10 + $0x8] sm:$0xff]  ;;  %v417_v4 = vld [vmem:[#allocation10] sm:$0xff] }
  0x1e   :  { %191 = vmatpush.bf16.msra.mxu1 %v418_v3  ;;  %v434_v5 = vld [vmem:[%s740_s4] ss:$0 sm:$0xff]  ;;  %v407_v11 = vld [vmem:[#allocation11 + $0x10] sm:$0xf]  ;;  %v422_v12 = vld [vmem:[#allocation11 + $0x14] sm:$0xf0] }
  0x1f   :  { %v421_v13 = vld [vmem:[#allocation11 + $0x14] sm:$0xf]  ;;  %v408_v14 = vor.u32 %v422_v12, %v407_v11  ;;  %v409_v15 = vld [vmem:[#allocation11 + $0x18] sm:$0xf0]  ;;  %v399_v17 = vld [vmem:[#allocation11] sm:$0xf] }
  0x20   :  { %v412_v16 = vor.u32 %v421_v13, %v409_v15  ;;  %v420_v18 = vld [vmem:[#allocation11 + $0x4] sm:$0xf0]  ;;  %v419_v19 = vld [vmem:[#allocation11 + $0x4] sm:$0xf]  ;;  %v401_v21 = vld [vmem:[#allocation11 + $0x8] sm:$0xf0] }
  0x21   :  { %154 = vmatpush.bf16.msra.mxu0 %v415_v1  ;;  %239 = vmatpush.bf16.msra.mxu2 %v408_v14  ;;  %v400_v20 = vor.u32 %v420_v18, %v399_v17  ;;  %v404_v22 = vor.u32 %v419_v19, %v401_v21  ;;  %v435_v23 = vld [vmem:[%s742_s6] ss:$0 sm:$0xff]  ;;  %v263_v41 = vand.u32 127, %v262_v38  ;;  %v271_v42 = vld [vmem:[#allocation7] sm:$0xff]  ;;  %v268_v43 = vld [vmem:[#allocation5] sm:$0xff]  ;;  %s638_s6 = smov [#allocation13]  }
  0x22   :  { %192 = vmatpush.bf16.msra.mxu1 %v417_v4  ;;  %252 = vmatpush.bf16.msra.mxu3 %v412_v16  ;;  %v204_v29 = vld [vmem:[%s744_s8] sm:$0x3]  ;;  %s364_s8 = sshll.u32 %s638_s6, 4  ;;  %s365_s8 = int_to_ptr.vmem [resolvable:$true] %s364_s8 }
  0x23   :  { %v206_v30 = vperm.slane %v204_v29, 0  ;;  %v207_v31 = vperm.slane %v204_v29, 1  ;;  %vm264_vm1 = vcmp.lt.s32.totalorder %v263_v41, 16  ;;  %vm265_vm2 = vcmp.lt.s32.totalorder %v263_v41, 8 }
  0x24   :  { %387 = vmatmul.msk.bf16.vlgmr.msra.gmra.mxu0 %vm143_vm0, %v122_v2  ;;  %vm266_vm3 = vcmp.ge.s32.totalorder %v263_v41, 8 }
  0x25   :  { %240 = vmatpush.bf16.msra.mxu2 %v400_v20  ;;  %vm723_vm4 = vmand %vm266_vm3, %vm264_vm1 }
  0x26   :  { %253 = vmatpush.bf16.msra.mxu3 %v404_v22 }
  0xa1   :  { %v156_v6 = vpop.f32.mrf.mxu0 }
  0xa2   :  { %v157_v7 = vadd.f32 %v434_v5, %v156_v6 }
  0xa4   :  { %v160_v8 = vmax.f32 %v157_v7, 0.0 }
  0xa6   :  { %v161_v9 = vpack.c.bf16 %v160_v8, %v160_v8 }
  0xa8   :  { %396 = vmatmul.msk.bf16.vlgmr.msra.gmra.mxu1 %vm143_vm0, %v161_v9 }
  0xa9   :  { %v158_v10 = vpop.f32.mrf.mxu0 }
 0x125   :  { %v194_v24 = vpop.f32.mrf.mxu1 }
 0x126   :  { %v195_v25 = vadd.f32 %v435_v23, %v194_v24 }
 0x128   :  { %v198_v26 = vmax.f32 %v195_v25, 0.0 }
 0x12a   :  { %v199_v27 = vpack.c.bf16 %v198_v26, %v198_v26 }
 0x12c   :  { %413 = vmatmul.msk.bf16.vlgmr.msra.gmra.mxu2 %vm143_vm0, %v199_v27  ;;  %414 = vmatmul.msk.bf16.vlgmr.msra.gmra.mxu3 %vm143_vm0, %v199_v27 }
 0x12d   :  { %v196_v28 = vpop.f32.mrf.mxu1 }
 0x1af   :  { %v242_v32 = vpop.f32.mrf.mxu2  ;;  %v255_v33 = vpop.f32.mrf.mxu3 }
 0x1b0   :  { %v243_v34 = vadd.f32 %v242_v32, %v206_v30  ;;  %v256_v35 = vadd.f32 %v255_v33, %v207_v31 }
 0x1b2   :  { %353 = vst [vmem:[#allocation13] sm:$0xff] %v243_v34  ;;  %v259_v36 = vmul.f32 0.5, %v256_v35 }
 0x1b3   :  { %354 = vst [vmem:[#allocation13 + $0x8] sm:$0xff] %v256_v35 }
 0x1b4   :  { %v260_v37 = vmul.f32 1.442695, %v259_v36 }
 0x1b6   :  { %436 = vpow2.f32 %v260_v37 }
 0x1b7   :  { %v244_v39 = vpop.f32.mrf.mxu2  ;;  %v257_v40 = vpop.f32.mrf.mxu3 }
 0x1bc   :  { %v437_v44 = vpop.eup %436 }
 0x1bd   :  { %v272_v45 = vmul.f32 %v437_v44, %v271_v42  ;;  %v269_v46 = vmul.f32 %v437_v44, %v268_v43 }
 0x1bf   :  { %v273_v47 = vadd.f32 %v272_v45, %v243_v34  ;;  %v270_v48 = vadd.f32 %v269_v46, %v243_v34 }
 0x1c1   :  { %v329_v49 = vsel %vm264_vm1, %v273_v47, -1e+30  ;;  %356 = vst [vmem:[#allocation13 + $0x18] sm:$0xff] %v273_v47  ;;  %v276_v50 = vsel %vm265_vm2, %v270_v48, -1e+30 }
 0x1c2   :  { %330 = vmax.xlane.f32.xlu1 %v329_v49  ;;  %355 = vst [vmem:[#allocation13 + $0x10] sm:$0xff] %v270_v48  ;;  %277 = vmax.xlane.f32.xlu0 %v276_v50  ;;  %v302_v52 = vsel %vm723_vm4, %v270_v48, -1e+30 }
 0x1ca   :  { %303 = vmax.xlane.f32.xlu0 %v302_v52 }
 0x235   :  { %v278_v53 = vpop.xlane.xlu0 %277  ;;  %v331_v56 = vpop.xlane.xlu1 %330 }
 0x236   :  { %v279_v54 = vsub.f32 %v276_v50, %v278_v53  ;;  %v332_v59 = vsub.f32 %v329_v49, %v331_v56 }
 0x238   :  { %v280_v55 = vmul.f32 1.442695, %v279_v54  ;;  %v333_v63 = vmul.f32 1.442695, %v332_v59 }
 0x23a   :  { %438 = vpow2.f32 %v280_v55 }
 0x23d   :  { %v304_v57 = vpop.xlane.xlu0 %303 }
 0x23e   :  { %v305_v58 = vsub.f32 %v302_v52, %v304_v57 }
 0x240   :  { %v306_v60 = vmul.f32 1.442695, %v305_v58  ;;  %v439_v61 = vpop.eup %438 }
 0x241   :  { %v282_v62 = vsel %vm265_vm2, %v439_v61, 0.0 }
 0x242   :  { %440 = vpow2.f32 %v306_v60  ;;  %283 = vadd.xlane.f32.xlu1 %v282_v62 }
 0x243   :  { %442 = vpow2.f32 %v333_v63 }
 0x248   :  { %v441_v0 = vpop.eup %440 }
 0x249   :  { %v308_v1 = vsel %vm723_vm4, %v441_v0, 0.0  ;;  %v443_v2 = vpop.eup %442 }
 0x24a   :  { %309 = vadd.xlane.f32.xlu2 %v308_v1  ;;  %v335_v3 = vsel %vm264_vm1, %v443_v2, 0.0 }
 0x252   :  { %336 = vadd.xlane.f32.xlu2 %v335_v3 }
 0x2b5   :  { %v284_v4 = vpop.xlane.xlu1 %283 }
 0x2b6   :  { %444 = vrcp.f32 %v284_v4  ;;  %v296_v14 = vand.u32 2147483648, %v284_v4  ;;  %vm290_vm6 = vweird.f32 %v284_v4  ;;  %v294_v15 = vand.u32 2147483647, %v284_v4 }
 0x2b8   :  { %v297_v21 = vor.u32 1.1754944e-38, %v296_v14  ;;  %vm295_vm9 = vcmp.eq.f32.partialorder %v294_v15, 8.507059e+37 }
 0x2bc   :  { %v445_v5 = vpop.eup %444 }
 0x2bd   :  { %v310_v6 = vpop.xlane.xlu2 %309  ;;  %v286_v7 = vmul.f32 %v445_v5, %v284_v4  ;;  %vm291_vm5 = vweird.f32 %v445_v5 }
 0x2be   :  { %446 = vrcp.f32 %v310_v6  ;;  %vm292_vm7 = vmor %vm290_vm6, %vm291_vm5  ;;  %v322_v17 = vand.u32 2147483648, %v310_v6  ;;  %v320_v20 = vand.u32 2147483647, %v310_v6  ;;  %vm316_vm10 = vweird.f32 %v310_v6 }
 0x2bf   :  { %v287_v8 = vsub.f32 1.0, %v286_v7 }
 0x2c0   :  { %v323_v25 = vor.u32 1.1754944e-38, %v322_v17  ;;  %vm321_vm12 = vcmp.eq.f32.partialorder %v320_v20, 8.507059e+37 }
 0x2c1   :  { %v288_v9 = vmul.f32 %v445_v5, %v287_v8 }
 0x2c3   :  { %v289_v11 = vadd.f32 %v445_v5, %v288_v9 }
 0x2c4   :  { %v447_v10 = vpop.eup %446 }
 0x2c5   :  { %v312_v12 = vmul.f32 %v447_v10, %v310_v6  ;;  %v337_v13 = vpop.xlane.xlu2 %336  ;;  %v293_v18 = vsel %vm292_vm7, %v445_v5, %v289_v11  ;;  %vm317_vm8 = vweird.f32 %v447_v10 }
 0x2c6   :  { %448 = vrcp.f32 %v337_v13  ;;  %v298_v24 = vsel %vm295_vm9, %v297_v21, %v293_v18  ;;  %vm318_vm11 = vmor %vm316_vm10, %vm317_vm8  ;;  %v349_v32 = vand.u32 2147483648, %v337_v13  ;;  %v347_v35 = vand.u32 2147483647, %v337_v13 }
 0x2c7   :  { %v313_v16 = vsub.f32 1.0, %v312_v12  ;;  %v299_v29 = vmul.f32 %v298_v24, %v282_v62  ;;  %vm343_vm14 = vweird.f32 %v337_v13 }
 0x2c8   :  { %v350_v37 = vor.u32 1.1754944e-38, %v349_v32  ;;  %vm348_vm0 = vcmp.eq.f32.partialorder %v347_v35, 8.507059e+37 }
 0x2c9   :  { %v314_v19 = vmul.f32 %v447_v10, %v313_v16 }
 0x2cb   :  { %v315_v22 = vadd.f32 %v447_v10, %v314_v19 }
 0x2cc   :  { %v449_v23 = vpop.eup %448 }
 0x2cd   :  { %v319_v26 = vsel %vm318_vm11, %v447_v10, %v315_v22  ;;  %v339_v27 = vmul.f32 %v449_v23, %v337_v13  ;;  %vm344_vm13 = vweird.f32 %v449_v23 }
 0x2ce   :  { %v324_v28 = vsel %vm321_vm12, %v323_v25, %v319_v26  ;;  %vm345_vm15 = vmor %vm343_vm14, %vm344_vm13 }
 0x2cf   :  { %v325_v30 = vmul.f32 %v324_v28, %v308_v1  ;;  %v340_v31 = vsub.f32 1.0, %v339_v27 }
 0x2d1   :  { %v326_v33 = vadd.f32 %v325_v30, %v299_v29  ;;  %v341_v34 = vmul.f32 %v449_v23, %v340_v31 }
 0x2d3   :  { %357 = vst [vmem:[#allocation13 + $0x20] sm:$0xff] %v326_v33  ;;  %v342_v36 = vadd.f32 %v449_v23, %v341_v34 }
 0x2d5   :  { %v346_v38 = vsel %vm345_vm15, %v449_v23, %v342_v36 }
 0x2d6   :  { %v351_v39 = vsel %vm348_vm0, %v350_v37, %v346_v38 }
 0x2d7   :  { %v352_v40 = vmul.f32 %v351_v39, %v335_v3 }
 0x2d9   :  { %358 = vst [vmem:[#allocation13 + $0x28] sm:$0xff] %v352_v40 }
 0x2da   :  { %369 = dma.vmem_to_hbm [thread:$0]  %s365_s8, 768, %s367_s1, [#allocation4]  }
 0x2db   :  { %626 = dma.done.wait [#allocation4], 768  }
 0x2dc   :  { %627 = vsyncadd [#allocation4], 4294966528 }
 0x2dd   :  { %374 = vsyncpa [#allocation3], 1 }
 0x2de   :  { %375 = vsyncpa [#allocation6], 1 }
 0x2df   :  { %376 = vsyncpa [#allocation9], 1 }
 0x2e0   :  { %377 = vsyncpa [#allocation12], 1 }
 0x2e1   :  { %378 = vsyncpa [#allocation4], 1 }

</bundles_post_ra>
